<compile_context>
chip_gen: v5e
topology: v5e:2x2
jax: 0.10.0
libtpu: 0.0.40
codegen_flags: <defaults>
</compile_context>

<pallas_src>
import functools

import jax
import jax.numpy as jnp
from jax.experimental import pallas as pl
from jax.experimental.pallas import tpu as pltpu

_EPS = 1e-07
_LANES = 128
_SUBLANES = 8
_MIN_CHUNK = _SUBLANES * _LANES          # 1024 elements
_TARGET_TILE_BYTES = 4 * 1024 * 1024     # ~4 MiB per input tile
_VMEM_LIMIT_BYTES = 64 * 1024 * 1024     # explicit scoped-VMEM limit
_MAX_SHARDS = 2                          # leading "parallel" axis (2 TCs on v7x)


def _iou_dots_kernel(pr_ref, gt_ref, inter_out_ref, sum_out_ref,
                     inter_acc, sum_acc, *, bps, rows_total, mask_possible):
    s = pl.program_id(0)
    i = pl.program_id(1)

    @pl.when(i == 0)
    def _():
        inter_acc[...] = jnp.zeros_like(inter_acc)
        sum_acc[...] = jnp.zeros_like(sum_acc)

    pr = pr_ref[...].astype(jnp.float32)
    gt = gt_ref[...].astype(jnp.float32)

    def accumulate(p, g):
        # Per-lane partial sums (VPU), accumulated across the inner grid axis.
        inter_acc[...] += jnp.sum(p * g, axis=0, keepdims=True)
        sum_acc[...] += jnp.sum(p + g, axis=0, keepdims=True)

    if not mask_possible:
        # No partial edge block and no phantom shard blocks can exist:
        # every block takes the cheap unmasked path.
        accumulate(pr, gt)
    else:
        block_rows = pr_ref.shape[0]
        # Un-clamped logical row offset of this grid step. Phantom blocks of
        # the last shard (whose index_map was clamped) get row0 >= rows_total
        # and are therefore fully zeroed -> no double counting.
        row0 = (s * bps + i) * block_rows
        needs_mask = row0 + block_rows > rows_total

        @pl.when(jnp.logical_not(needs_mask))
        def _():
            accumulate(pr, gt)

        @pl.when(needs_mask)
        def _():
            rid = row0 + jax.lax.broadcasted_iota(jnp.int32, pr.shape, 0)
            valid = rid < rows_total
            zeros = jnp.zeros_like(pr)
            # jnp.where (not a mask-multiply) so stale-VMEM NaN/Inf garbage in
            # the partial edge tile cannot leak into the sums.
            accumulate(jnp.where(valid, pr, zeros), jnp.where(valid, gt, zeros))

    @pl.when(i == pl.num_programs(1) - 1)
    def _():
        inter_out_ref[...] = inter_acc[...].reshape(inter_out_ref.shape)
        sum_out_ref[...] = sum_acc[...].reshape(sum_out_ref.shape)


def _iou_dots_partials(pr_flat, gt_flat, n_main):
    """Returns (sum(pr*gt), sum(pr+gt)) over the first n_main elements."""
    n = pr_flat.shape[0]
    if n_main != n:
        # TODO(synk): a manual-DMA (pl.ANY) kernel could stream the unaligned
        # prefix directly from the original buffer; XLA may materialize a
        # prefix copy here for non-1024-aligned sizes.
        pr_flat = pr_flat[:n_main]
        gt_flat = gt_flat[:n_main]

    rows = n_main // _LANES                      # multiple of 8
    pr2 = pr_flat.reshape(rows, _LANES)
    gt2 = gt_flat.reshape(rows, _LANES)

    itemsize = max(pr2.dtype.itemsize, gt2.dtype.itemsize)
    block_rows = _TARGET_TILE_BYTES // (_LANES * itemsize)
    block_rows = max(_SUBLANES, (block_rows // _SUBLANES) * _SUBLANES)
    block_rows = min(block_rows, rows)           # both multiples of 8
    num_blocks = pl.cdiv(rows, block_rows)

    # Adaptive sharding: only use the parallel shard axis when there are
    # enough blocks to make it worthwhile (otherwise half the grid would be
    # phantom blocks that are DMA'd and zeroed).
    num_shards = _MAX_SHARDS if num_blocks >= 4 else 1
    bps = pl.cdiv(num_blocks, num_shards)        # blocks per shard
    mask_possible = (rows % block_rows != 0) or (num_blocks % num_shards != 0)

    def in_map(s, i):
        # Clamp so phantom blocks of the last shard stay in bounds; their
        # contribution is zeroed in-kernel via the un-clamped row0 mask.
        return (jnp.minimum(s * bps + i, num_blocks - 1), 0)

    kernel = functools.partial(
        _iou_dots_kernel, bps=bps, rows_total=rows, mask_possible=mask_possible)

    inter_part, sum_part = pl.pallas_call(
        kernel,
        out_shape=(
            jax.ShapeDtypeStruct((num_shards, 1, _LANES), jnp.float32),
            jax.ShapeDtypeStruct((num_shards, 1, _LANES), jnp.float32),
        ),
        grid_spec=pltpu.PrefetchScalarGridSpec(
            num_scalar_prefetch=0,
            grid=(num_shards, bps),
            in_specs=[
                pl.BlockSpec((block_rows, _LANES), in_map),
                pl.BlockSpec((block_rows, _LANES), in_map),
            ],
            out_specs=[
                pl.BlockSpec((1, 1, _LANES), lambda s, i: (s, 0, 0)),
                pl.BlockSpec((1, 1, _LANES), lambda s, i: (s, 0, 0)),
            ],
            scratch_shapes=[
                pltpu.VMEM((1, _LANES), jnp.float32),   # intersection partials
                pltpu.VMEM((1, _LANES), jnp.float32),   # sum(pr + gt) partials
            ],
        ),
        compiler_params=pltpu.CompilerParams(
            dimension_semantics=("parallel", "arbitrary"),
            vmem_limit_bytes=_VMEM_LIMIT_BYTES,
        ),
    )(pr2, gt2)

    return jnp.sum(inter_part), jnp.sum(sum_part)


def iou_dots_loss_pallas(pr, gt, eps=_EPS):
    """Pallas TPU implementation of IouDotsLoss.forward(pr, gt) -> scalar."""
    assert pr.shape == gt.shape, "pr and gt must have identical shapes"

    pr_flat = pr.reshape(-1)
    gt_flat = gt.reshape(-1)
    n = pr_flat.shape[0]
    assert n > 0

    # Split into a 1024-aligned prefix (streamed by the kernel) and a tiny
    # tail (< 1024 elements) reduced in plain JAX — no padded full copies.
    n_main = (n // _MIN_CHUNK) * _MIN_CHUNK
    tail = n - n_main

    if tail:
        pr_t = pr_flat[n_main:].astype(jnp.float32)
        gt_t = gt_flat[n_main:].astype(jnp.float32)
        inter_tail = jnp.sum(pr_t * gt_t)
        sum_tail = jnp.sum(pr_t + gt_t)
    else:
        inter_tail = jnp.float32(0.0)
        sum_tail = jnp.float32(0.0)

    if n_main == 0:
        # Entire input is smaller than one (8, 128) chunk: pure-JAX reduction.
        inter = inter_tail
        total = sum_tail
    else:
        inter_main, sum_main = _iou_dots_partials(pr_flat, gt_flat, n_main)
        inter = inter_main + inter_tail
        total = sum_main + sum_tail

    union = total - inter + eps
    return (1.0 - (inter + eps) / union).astype(jnp.float32)


def _reference_iou_dots_loss(pr, gt, eps=_EPS):
    pr = pr.astype(jnp.float32)
    gt = gt.astype(jnp.float32)
    inter = jnp.sum(pr * gt)
    union = jnp.sum(pr) + jnp.sum(gt) - inter + eps
    return 1.0 - (inter + eps) / union


def _check(shape, key, atol):
    k_pr, k_gt = jax.random.split(key)
    pr = jax.nn.sigmoid(jax.random.normal(k_pr, shape, jnp.float32))
    gt = (jax.random.uniform(k_gt, shape) > 0.7).astype(jnp.float32)
    loss = jax.block_until_ready(iou_dots_loss_pallas(pr, gt))
    ref = _reference_iou_dots_loss(pr, gt)
    assert jnp.allclose(loss, ref, atol=atol, rtol=atol), (shape, loss, ref)


if __name__ == "__main__":
    key = jax.random.PRNGKey(0)
    k0, k1, k2 = jax.random.split(key, 3)

    # Small NCHW case (batch=2, channels=4, spatial=16x16): aligned fast path.
    _check((2, 4, 16, 16), k0, atol=1e-5)

    # Non-aligned size with a partial edge block: exercises the runtime-gated
    # in-kernel mask plus the JAX tail reduction.
    _check((2, 8, 300, 300), k1, atol=2e-4)

    # Large aligned size with an odd block count: exercises the 2-shard grid
    # and the clamped phantom-block masking.
    _check((5, 8, 512, 256), k2, atol=2e-4)

    print("KERNEL_OK")
</pallas_src>

<mosaic_0001>
module attributes {stable_mosaic.version = 11 : i64} {
  func.func @_iou_dots_kernel(%arg0: i32, %arg1: i32, %arg2: memref<16x128xf32, #tpu.memory_space<vmem>>, %arg3: memref<16x128xf32, #tpu.memory_space<vmem>>, %arg4: memref<1x1x128xf32, #tpu.memory_space<vmem>>, %arg5: memref<1x1x128xf32, #tpu.memory_space<vmem>>, %arg6: memref<1x128xf32, #tpu.memory_space<vmem>>, %arg7: memref<1x128xf32, #tpu.memory_space<vmem>>) attributes {dimension_semantics = [#tpu.dimension_semantics<parallel>, #tpu.dimension_semantics<arbitrary>], iteration_bounds = array<i64: 1, 1>, scalar_prefetch = 0 : i64, scratch_operands = 2 : i64, tpu.core_type = #tpu.core_type<tc>, window_params = [{transform_indices = @transform_0, window_bounds = array<i64: 16, 128>}, {transform_indices = @transform_1, window_bounds = array<i64: 16, 128>}, {transform_indices = @transform_2, window_bounds = array<i64: 1, 1, 128>}, {transform_indices = @transform_3, window_bounds = array<i64: 1, 1, 128>}]} {
    %c0_i32 = arith.constant 0 : i32
    %0 = arith.cmpi eq, %arg1, %c0_i32 : i32
    %1 = arith.extui %0 : i1 to i32
    %c0_i32_0 = arith.constant 0 : i32
    %2 = arith.cmpi ne, %1, %c0_i32_0 : i32
    scf.if %2 {
      %cst_15 = arith.constant 0.000000e+00 : f32
      %20 = vector.broadcast %cst_15 : f32 to vector<1x128xf32>
      %c0_16 = arith.constant 0 : index
      %c0_17 = arith.constant 0 : index
      %21 = vector.load %arg6[%c0_16, %c0_17] : memref<1x128xf32, #tpu.memory_space<vmem>>, vector<1x128xf32>
      tpu.vector_store %arg6[%c0_16, %c0_17], %20 {strides = array<i32>} : memref<1x128xf32, #tpu.memory_space<vmem>>, vector<1x128xf32>,
      %cst_18 = arith.constant 0.000000e+00 : f32
      %22 = vector.broadcast %cst_18 : f32 to vector<1x128xf32>
      %c0_19 = arith.constant 0 : index
      %c0_20 = arith.constant 0 : index
      %23 = vector.load %arg7[%c0_19, %c0_20] : memref<1x128xf32, #tpu.memory_space<vmem>>, vector<1x128xf32>
      tpu.vector_store %arg7[%c0_19, %c0_20], %22 {strides = array<i32>} : memref<1x128xf32, #tpu.memory_space<vmem>>, vector<1x128xf32>,
    } else {
    }
    %c0 = arith.constant 0 : index
    %c0_1 = arith.constant 0 : index
    %3 = vector.load %arg2[%c0, %c0_1] : memref<16x128xf32, #tpu.memory_space<vmem>>, vector<16x128xf32>
    %c0_2 = arith.constant 0 : index
    %c0_3 = arith.constant 0 : index
    %4 = vector.load %arg3[%c0_2, %c0_3] : memref<16x128xf32, #tpu.memory_space<vmem>>, vector<16x128xf32>
    %c0_4 = arith.constant 0 : index
    %c0_5 = arith.constant 0 : index
    %5 = vector.load %arg6[%c0_4, %c0_5] : memref<1x128xf32, #tpu.memory_space<vmem>>, vector<1x128xf32>
    %6 = arith.mulf %3, %4 : vector<16x128xf32>
    %cst = arith.constant dense<0.000000e+00> : vector<128xf32>
    %7 = vector.multi_reduction <add>, %6, %cst [0] : vector<16x128xf32> to vector<128xf32>
    %8 = vector.shape_cast %7 : vector<128xf32> to vector<1x128xf32>
    %9 = arith.addf %5, %8 : vector<1x128xf32>
    %c0_6 = arith.constant 0 : index
    %c0_7 = arith.constant 0 : index
    %10 = vector.load %arg6[%c0_6, %c0_7] : memref<1x128xf32, #tpu.memory_space<vmem>>, vector<1x128xf32>
    tpu.vector_store %arg6[%c0_6, %c0_7], %9 {strides = array<i32>} : memref<1x128xf32, #tpu.memory_space<vmem>>, vector<1x128xf32>,
    %c0_8 = arith.constant 0 : index
    %c0_9 = arith.constant 0 : index
    %11 = vector.load %arg7[%c0_8, %c0_9] : memref<1x128xf32, #tpu.memory_space<vmem>>, vector<1x128xf32>
    %12 = arith.addf %3, %4 : vector<16x128xf32>
    %cst_10 = arith.constant dense<0.000000e+00> : vector<128xf32>
    %13 = vector.multi_reduction <add>, %12, %cst_10 [0] : vector<16x128xf32> to vector<128xf32>
    %14 = vector.shape_cast %13 : vector<128xf32> to vector<1x128xf32>
    %15 = arith.addf %11, %14 : vector<1x128xf32>
    %c0_11 = arith.constant 0 : index
    %c0_12 = arith.constant 0 : index
    %16 = vector.load %arg7[%c0_11, %c0_12] : memref<1x128xf32, #tpu.memory_space<vmem>>, vector<1x128xf32>
    tpu.vector_store %arg7[%c0_11, %c0_12], %15 {strides = array<i32>} : memref<1x128xf32, #tpu.memory_space<vmem>>, vector<1x128xf32>,
    %c0_i32_13 = arith.constant 0 : i32
    %17 = arith.cmpi eq, %arg1, %c0_i32_13 : i32
    %18 = arith.extui %17 : i1 to i32
    %c0_i32_14 = arith.constant 0 : i32
    %19 = arith.cmpi ne, %18, %c0_i32_14 : i32
    scf.if %19 {
      %c0_15 = arith.constant 0 : index
      %c0_16 = arith.constant 0 : index
      %20 = vector.load %arg6[%c0_15, %c0_16] : memref<1x128xf32, #tpu.memory_space<vmem>>, vector<1x128xf32>
      %21 = vector.shape_cast %20 : vector<1x128xf32> to vector<1x1x128xf32>
      %c0_17 = arith.constant 0 : index
      %c0_18 = arith.constant 0 : index
      %c0_19 = arith.constant 0 : index
      %22 = vector.load %arg4[%c0_17, %c0_18, %c0_19] : memref<1x1x128xf32, #tpu.memory_space<vmem>>, vector<1x1x128xf32>
      tpu.vector_store %arg4[%c0_17, %c0_18, %c0_19], %21 {strides = array<i32>} : memref<1x1x128xf32, #tpu.memory_space<vmem>>, vector<1x1x128xf32>,
      %c0_20 = arith.constant 0 : index
      %c0_21 = arith.constant 0 : index
      %23 = vector.load %arg7[%c0_20, %c0_21] : memref<1x128xf32, #tpu.memory_space<vmem>>, vector<1x128xf32>
      %24 = vector.shape_cast %23 : vector<1x128xf32> to vector<1x1x128xf32>
      %c0_22 = arith.constant 0 : index
      %c0_23 = arith.constant 0 : index
      %c0_24 = arith.constant 0 : index
      %25 = vector.load %arg5[%c0_22, %c0_23, %c0_24] : memref<1x1x128xf32, #tpu.memory_space<vmem>>, vector<1x1x128xf32>
      tpu.vector_store %arg5[%c0_22, %c0_23, %c0_24], %24 {strides = array<i32>} : memref<1x1x128xf32, #tpu.memory_space<vmem>>, vector<1x1x128xf32>,
    } else {
    }
    return
  }
  func.func @transform_0(%arg0: i32, %arg1: i32) -> (i32, i32) {
    %c1_i32 = arith.constant 1 : i32
    %0 = arith.muli %arg0, %c1_i32 : i32
    %1 = arith.addi %0, %arg1 : i32
    %c0_i32 = arith.constant 0 : i32
    %2 = arith.minsi %1, %c0_i32 : i32
    %c0_i32_0 = arith.constant 0 : i32
    %c0_i32_1 = arith.constant 0 : i32
    return %2, %c0_i32_0 : i32, i32
  }
  func.func @transform_1(%arg0: i32, %arg1: i32) -> (i32, i32) {
    %c1_i32 = arith.constant 1 : i32
    %0 = arith.muli %arg0, %c1_i32 : i32
    %1 = arith.addi %0, %arg1 : i32
    %c0_i32 = arith.constant 0 : i32
    %2 = arith.minsi %1, %c0_i32 : i32
    %c0_i32_0 = arith.constant 0 : i32
    %c0_i32_1 = arith.constant 0 : i32
    return %2, %c0_i32_0 : i32, i32
  }
  func.func @transform_2(%arg0: i32, %arg1: i32) -> (i32, i32, i32) {
    %c0_i32 = arith.constant 0 : i32
    %c0_i32_0 = arith.constant 0 : i32
    %c0_i32_1 = arith.constant 0 : i32
    return %arg0, %c0_i32, %c0_i32_0 : i32, i32, i32
  }
  func.func @transform_3(%arg0: i32, %arg1: i32) -> (i32, i32, i32) {
    %c0_i32 = arith.constant 0 : i32
    %c0_i32_0 = arith.constant 0 : i32
    %c0_i32_1 = arith.constant 0 : i32
    return %arg0, %c0_i32, %c0_i32_0 : i32, i32, i32
  }
}

</mosaic_0001>

<bundles_post_ra>
// kernel: tpu_custom_call.1
= control target key start
LH: loop header
LB: loop body
LE: loop exit
PB: predicated region body
PF: predicated region fallthrough
CT: control target
= control target key end

     0   :  { %9 = vsyncpa [#allocation5], 0  ;;  %s296_s0 = inlined_call_operand.hbm [shape: f32[16,128], index: 0, kind: input, shape index: {}]   ;;  %s297_s1 = inlined_call_operand.hbm [shape: f32[16,128], index: 1, kind: input, shape index: {}]   ;;  %s298_s2 = inlined_call_operand.hbm [shape: f32[1,1,128], index: 2, kind: output, shape index: {0}]   ;;  %s299_s3 = inlined_call_operand.hbm [shape: f32[1,1,128], index: 3, kind: output, shape index: {1}]  }
   0x1   :  { %10 = vsyncpa [#allocation8], 0 }
   0x2   :  { %11 = vsyncpa [#allocation6], 0 }
   0x3   :  { %12 = vsyncpa [#allocation11], 0  ;;  %s23_s14 = sshll.u32 %s296_s0, 4  ;;  %s257_s15 = smov [#allocation4]   ;;  %s24_s14 = int_to_ptr.hbm [resolvable:$true] %s23_s14 }
   0x4   :  { %s25_s16 = sshll.u32 %s257_s15, 4  ;;  %s42_s19 = sshll.u32 %s297_s1, 4  ;;  %s26_s16 = int_to_ptr.vmem [resolvable:$true] %s25_s16  ;;  %s43_s19 = int_to_ptr.hbm [resolvable:$true] %s42_s19 }
   0x5   :  { %s258_s20 = smov 128   ;;  %s259_s21 = smov 8  }
   0x6   :  { %31 = dma.hbm_to_vmem [thread:$0]  %s24_s14, 256, %s26_s16, [#allocation5], %s258_s20, %s258_s20, %s259_s21  }
   0x7   :  { %s260_s22 = smov [#allocation7]  }
   0x8   :  { %s44_s23 = sshll.u32 %s260_s22, 4  ;;  %s45_s23 = int_to_ptr.vmem [resolvable:$true] %s44_s23 }
   0x9   :  { %50 = dma.hbm_to_vmem [thread:$0]  %s43_s19, 256, %s45_s23, [#allocation8], %s258_s20, %s258_s20, %s259_s21  }
   0xa   :  { %249 = dma.done.wait [#allocation5], 256  }
   0xb   :  { %250 = vsyncadd [#allocation5], 4294967040 }
   0xc   :  { %251 = dma.done.wait [#allocation8], 256  }
   0xd   :  { %252 = vsyncadd [#allocation8], 4294967040  ;;  %v261_v0 = vmov 0.0   ;;  %v73_v1 = vld [vmem:[#allocation4] sm:$0xff]  ;;  %v74_v2 = vld [vmem:[#allocation4 + $0x8] sm:$0xff]  ;;  %s262_s0 = smov [#allocation9]  }
   0xe   :  { %71 = vst [vmem:[#allocation2] sm:$0x1] %v261_v0  ;;  %v75_v3 = vld [vmem:[#allocation7] sm:$0xff]  ;;  %v76_v4 = vld [vmem:[#allocation7 + $0x8] sm:$0xff]  ;;  %s113_s1 = sshll.u32 %s262_s0, 4  ;;  %s115_s26 = sshll.u32 %s298_s2, 4  ;;  %s114_s1 = int_to_ptr.vmem [resolvable:$true] %s113_s1  ;;  %s116_s26 = int_to_ptr.hbm [resolvable:$true] %s115_s26 }
   0xf   :  { %72 = vst [vmem:[#allocation3] sm:$0x1] %v261_v0  ;;  %v78_v5 = vmul.f32 %v75_v3, %v73_v1  ;;  %v90_v6 = vadd.f32 %v75_v3, %v73_v1  ;;  %v79_v7 = vmul.f32 %v76_v4, %v74_v2  ;;  %v91_v8 = vadd.f32 %v76_v4, %v74_v2  ;;  %s263_s27 = smov [#allocation10]   ;;  %s126_s4 = sshll.u32 %s299_s3, 4  ;;  %s127_s4 = int_to_ptr.hbm [resolvable:$true] %s126_s4 }
  0x10   :  { %s124_s28 = sshll.u32 %s263_s27, 4  ;;  %s125_s28 = int_to_ptr.vmem [resolvable:$true] %s124_s28 }
  0x11   :  { %v80_v9 = vadd.f32 %v79_v7, %v78_v5  ;;  %v92_v10 = vadd.f32 %v91_v8, %v90_v6 }
  0x13   :  { %v81_v11 = vrot.slane %v80_v9, 4  ;;  %v93_v12 = vrot.slane %v92_v10, 4 }
  0x15   :  { %v82_v13 = vadd.f32 %v81_v11, %v80_v9  ;;  %v94_v14 = vadd.f32 %v93_v12, %v92_v10  ;;  %v77_v21 = vld [vmem:[#allocation2] sm:$0x1] }
  0x16   :  { %v89_v22 = vld [vmem:[#allocation3] sm:$0x1] }
  0x17   :  { %v83_v15 = vrot.slane %v82_v13, 2  ;;  %v95_v16 = vrot.slane %v94_v14, 2 }
  0x19   :  { %v84_v17 = vadd.f32 %v83_v15, %v82_v13  ;;  %v96_v18 = vadd.f32 %v95_v16, %v94_v14 }
  0x1b   :  { %v85_v19 = vrot.slane %v84_v17, 1  ;;  %v97_v20 = vrot.slane %v96_v18, 1 }
  0x1d   :  { %v86_v23 = vadd.f32 %v85_v19, %v84_v17  ;;  %v98_v24 = vadd.f32 %v97_v20, %v96_v18 }
  0x1f   :  { %v87_v25 = vadd.f32 %v86_v23, %v77_v21  ;;  %v99_v26 = vadd.f32 %v98_v24, %v89_v22 }
  0x21   :  { %88 = vst [vmem:[#allocation2] sm:$0x1] %v87_v25 }
  0x22   :  { %100 = vst [vmem:[#allocation3] sm:$0x1] %v99_v26 }
  0x28   :  { %v104_v27 = vld [vmem:[#allocation2] sm:$0x1] }
  0x29   :  { %105 = vst [vmem:[#allocation9] sm:$0x1] %v104_v27  ;;  %v106_v28 = vld [vmem:[#allocation3] sm:$0x1] }
  0x2a   :  { %107 = vst [vmem:[#allocation10] sm:$0x1] %v106_v28  ;;  %118 = dma.vmem_to_hbm [thread:$0]  %s114_s1, 16, %s116_s26, [#allocation6]  }
  0x2b   :  { %129 = dma.vmem_to_hbm [thread:$0]  %s125_s28, 16, %s127_s4, [#allocation11]  }
  0x2c   :  { %253 = dma.done.wait [#allocation6], 16  }
  0x2d   :  { %254 = vsyncadd [#allocation6], 4294967280 }
  0x2e   :  { %255 = dma.done.wait [#allocation11], 16  }
  0x2f   :  { %256 = vsyncadd [#allocation11], 4294967280 }
  0x30   :  { %138 = vsyncpa [#allocation5], 1 }
  0x31   :  { %139 = vsyncpa [#allocation8], 1 }
  0x32   :  { %140 = vsyncpa [#allocation6], 1 }
  0x33   :  { %141 = vsyncpa [#allocation11], 1 }

</bundles_post_ra>
